<compile_context>
chip_gen: v5e
topology: v5e:2x2
jax: 0.10.0
libtpu: 0.0.40
codegen_flags: <defaults>
</compile_context>

<pallas_src>
import functools

import jax
import jax.numpy as jnp
from jax.experimental import pallas as pl
from jax.experimental.pallas import tpu as pltpu


def _round_up(x: int, m: int) -> int:
    return ((x + m - 1) // m) * m


# ---------------------------------------------------------------------------
# Kernel: one batch tile of the fused MLP  (x @ W1 + b1 -> relu -> @ W2 + b2)
# ---------------------------------------------------------------------------
def _actor_fwd_kernel(x_ref, w1_ref, b1_ref, w2_ref, b2_ref, out_ref):
    # x_ref  : (TB, in_pad)        VMEM (batch tile)
    # w1_ref : (in_pad, h_pad)     VMEM (resident across grid steps)
    # b1_ref : (1, h_pad)          VMEM
    # w2_ref : (h_pad, out_pad)    VMEM
    # b2_ref : (1, out_pad)        VMEM
    # out_ref: (TB, out_pad)       VMEM (lane-dense: out_pad is a 128-multiple)
    x = x_ref[...]
    # NOTE: if h_size ever grows, cast x/w1/w2 to bf16 here (keep
    # preferred_element_type=jnp.float32) for the full v6e/v7x MXU rate.
    h = jnp.dot(x, w1_ref[...], preferred_element_type=jnp.float32) + b1_ref[...]
    h = jnp.maximum(h, 0.0)  # relu (f32 VPU epilogue)
    o = jnp.dot(h, w2_ref[...], preferred_element_type=jnp.float32) + b2_ref[...]
    out_ref[...] = o.astype(out_ref.dtype)


# ---------------------------------------------------------------------------
# Wrapper
# ---------------------------------------------------------------------------
def actor_forward(y_star, padded_params, action_s, *, block_b=128):
    """Fused Actor MLP on padded params; returns (mu_a, log_std_a)."""
    w1, b1, w2, b2 = padded_params
    B, in_s = y_star.shape
    in_pad, h_pad = w1.shape
    out_pad = w2.shape[1]

    # Batch tile: multiple of 8 (f32 sublane); pad the batch so the grid is exact.
    tb = min(block_b, _round_up(B, 8))
    b_pad = _round_up(B, tb)
    x = jnp.zeros((b_pad, in_pad), y_star.dtype).at[:B, :in_s].set(y_star)

    grid = (b_pad // tb,)

    cost = pl.CostEstimate(
        flops=2 * b_pad * (in_pad * h_pad + h_pad * out_pad),
        transcendentals=0,
        bytes_accessed=4 * (x.size + w1.size + b1.size + w2.size + b2.size
                            + b_pad * out_pad),
    )

    out = pl.pallas_call(
        _actor_fwd_kernel,
        out_shape=jax.ShapeDtypeStruct((b_pad, out_pad), jnp.float32),
        grid=grid,
        in_specs=[
            pl.BlockSpec((tb, in_pad), lambda i: (i, 0)),       # batch-tiled x
            pl.BlockSpec((in_pad, h_pad), lambda i: (0, 0)),    # resident weights
            pl.BlockSpec((1, h_pad), lambda i: (0, 0)),
            pl.BlockSpec((h_pad, out_pad), lambda i: (0, 0)),
            pl.BlockSpec((1, out_pad), lambda i: (0, 0)),
        ],
        out_specs=pl.BlockSpec((tb, out_pad), lambda i: (i, 0)),
        compiler_params=pltpu.CompilerParams(
            dimension_semantics=("parallel",)),                  # v7x: 2 TCs
        cost_estimate=cost,
    )(x, w1, b1, w2, b2)

    # Slice back to logical batch / logical output width, then split.
    out = out[:B, : 2 * action_s]
    mu_a = out[..., :action_s]
    log_std_a = out[..., action_s:]
    return mu_a, log_std_a


# ---------------------------------------------------------------------------
# Parameter init (matches Actor.small_weight_init: normal(mean=0, std=0.1))
# ---------------------------------------------------------------------------
def init_actor_params(key, input_s, action_s, h_size):
    """Logical (unpadded) params, stored (in, out) so the kernel does x @ W + b."""
    k1, k2, k3, k4 = jax.random.split(key, 4)
    w1 = 0.1 * jax.random.normal(k1, (input_s, h_size), dtype=jnp.float32)
    b1 = 0.1 * jax.random.normal(k2, (1, h_size), dtype=jnp.float32)
    w2 = 0.1 * jax.random.normal(k3, (h_size, action_s * 2), dtype=jnp.float32)
    b2 = 0.1 * jax.random.normal(k4, (1, action_s * 2), dtype=jnp.float32)
    return (w1, b1, w2, b2)


def pad_actor_params(params):
    """Zero-pad params to TPU-friendly tiles: in->8k, hidden->128k, out->128k."""
    w1, b1, w2, b2 = params
    in_s, h = w1.shape
    out = w2.shape[1]
    in_pad = _round_up(in_s, 8)
    h_pad = _round_up(h, 128)
    out_pad = _round_up(out, 128)

    w1p = jnp.zeros((in_pad, h_pad), w1.dtype).at[:in_s, :h].set(w1)
    b1p = jnp.zeros((1, h_pad), b1.dtype).at[:, :h].set(b1)
    w2p = jnp.zeros((h_pad, out_pad), w2.dtype).at[:h, :out].set(w2)
    b2p = jnp.zeros((1, out_pad), b2.dtype).at[:, :out].set(b2)
    return (w1p, b1p, w2p, b2p)


if __name__ == "__main__":
    # Small shapes consistent with the module (Actor defaults h_size=56).
    batch = 256          # exercises a 2-step batch grid with TB=128
    input_s = 4
    action_s = 2
    h_size = 56

    key = jax.random.PRNGKey(0)
    pkey, xkey = jax.random.split(key)

    params = init_actor_params(pkey, input_s, action_s, h_size)
    padded = pad_actor_params(params)
    y_star = jax.random.normal(xkey, (batch, input_s), dtype=jnp.float32)

    fwd = jax.jit(functools.partial(actor_forward, action_s=action_s))
    mu_a, log_std_a = fwd(y_star, padded)
    jax.block_until_ready((mu_a, log_std_a))

    # Reference in plain JAX on the *unpadded* params.
    w1, b1, w2, b2 = params
    h_ref = jnp.maximum(y_star @ w1 + b1, 0.0)
    o_ref = h_ref @ w2 + b2
    assert mu_a.shape == (batch, action_s)
    assert log_std_a.shape == (batch, action_s)
    assert jnp.allclose(mu_a, o_ref[..., :action_s], atol=1e-5)
    assert jnp.allclose(log_std_a, o_ref[..., action_s:], atol=1e-5)

    # TODO(synk): computeAction's torch.randn_like sampling and the Adam
    # optimizer update (ActionGrad_update) are training/runtime utilities,
    # not part of forward(); they are not implemented as kernels here.

    print("KERNEL_OK")
</pallas_src>

<mosaic_0001>
module attributes {stable_mosaic.version = 11 : i64} {
  func.func @_actor_fwd_kernel(%arg0: i32, %arg1: memref<128x8xf32, #tpu.memory_space<vmem>>, %arg2: memref<8x128xf32, #tpu.memory_space<vmem>>, %arg3: memref<1x128xf32, #tpu.memory_space<vmem>>, %arg4: memref<128x128xf32, #tpu.memory_space<vmem>>, %arg5: memref<1x128xf32, #tpu.memory_space<vmem>>, %arg6: memref<128x128xf32, #tpu.memory_space<vmem>>) attributes {dimension_semantics = [#tpu.dimension_semantics<parallel>], iteration_bounds = array<i64: 2>, scalar_prefetch = 0 : i64, scratch_operands = 0 : i64, tpu.core_type = #tpu.core_type<tc>, window_params = [{transform_indices = @transform_0, window_bounds = array<i64: 128, 8>}, {pipeline_mode = #tpu.pipeline_mode<synchronous>, transform_indices = @transform_1, window_bounds = array<i64: 8, 128>}, {pipeline_mode = #tpu.pipeline_mode<synchronous>, transform_indices = @transform_2, window_bounds = array<i64: 1, 128>}, {pipeline_mode = #tpu.pipeline_mode<synchronous>, transform_indices = @transform_3, window_bounds = array<i64: 128, 128>}, {pipeline_mode = #tpu.pipeline_mode<synchronous>, transform_indices = @transform_4, window_bounds = array<i64: 1, 128>}, {transform_indices = @transform_5, window_bounds = array<i64: 128, 128>}]} {
    %c0 = arith.constant 0 : index
    %c0_0 = arith.constant 0 : index
    %0 = vector.load %arg1[%c0, %c0_0] : memref<128x8xf32, #tpu.memory_space<vmem>>, vector<128x8xf32>
    %c0_1 = arith.constant 0 : index
    %c0_2 = arith.constant 0 : index
    %1 = vector.load %arg2[%c0_1, %c0_2] : memref<8x128xf32, #tpu.memory_space<vmem>>, vector<8x128xf32>
    %cst = arith.constant dense<0.000000e+00> : vector<128x128xf32>
    %2 = tpu.matmul %0, %1, %cst {dimension_numbers = #tpu.dot_dimension_numbers<[1], [0], [0], [1], [0, 0, 1, 1], [], []>} : vector<128x8xf32>, vector<8x128xf32>, vector<128x128xf32> -> vector<128x128xf32>
    %c0_3 = arith.constant 0 : index
    %c0_4 = arith.constant 0 : index
    %3 = vector.load %arg3[%c0_3, %c0_4] : memref<1x128xf32, #tpu.memory_space<vmem>>, vector<1x128xf32>
    %4 = vector.broadcast %3 : vector<1x128xf32> to vector<128x128xf32>
    %5 = arith.addf %2, %4 : vector<128x128xf32>
    %cst_5 = arith.constant 0.000000e+00 : f32
    %6 = vector.broadcast %cst_5 : f32 to vector<128x128xf32>
    %7 = arith.maximumf %5, %6 : vector<128x128xf32>
    %c0_6 = arith.constant 0 : index
    %c0_7 = arith.constant 0 : index
    %8 = vector.load %arg4[%c0_6, %c0_7] : memref<128x128xf32, #tpu.memory_space<vmem>>, vector<128x128xf32>
    %cst_8 = arith.constant dense<0.000000e+00> : vector<128x128xf32>
    %9 = tpu.matmul %7, %8, %cst_8 {dimension_numbers = #tpu.dot_dimension_numbers<[1], [0], [0], [1], [0, 0, 1, 1], [], []>} : vector<128x128xf32>, vector<128x128xf32>, vector<128x128xf32> -> vector<128x128xf32>
    %c0_9 = arith.constant 0 : index
    %c0_10 = arith.constant 0 : index
    %10 = vector.load %arg5[%c0_9, %c0_10] : memref<1x128xf32, #tpu.memory_space<vmem>>, vector<1x128xf32>
    %11 = vector.broadcast %10 : vector<1x128xf32> to vector<128x128xf32>
    %12 = arith.addf %9, %11 : vector<128x128xf32>
    %c0_11 = arith.constant 0 : index
    %c0_12 = arith.constant 0 : index
    %13 = vector.load %arg6[%c0_11, %c0_12] : memref<128x128xf32, #tpu.memory_space<vmem>>, vector<128x128xf32>
    tpu.vector_store %arg6[%c0_11, %c0_12], %12 {strides = array<i32>} : memref<128x128xf32, #tpu.memory_space<vmem>>, vector<128x128xf32>,
    return
  }
  func.func @transform_0(%arg0: i32) -> (i32, i32) {
    %c0_i32 = arith.constant 0 : i32
    %c0_i32_0 = arith.constant 0 : i32
    return %arg0, %c0_i32 : i32, i32
  }
  func.func @transform_1(%arg0: i32) -> (i32, i32) {
    %c0_i32 = arith.constant 0 : i32
    %c0_i32_0 = arith.constant 0 : i32
    %c0_i32_1 = arith.constant 0 : i32
    return %c0_i32, %c0_i32_0 : i32, i32
  }
  func.func @transform_2(%arg0: i32) -> (i32, i32) {
    %c0_i32 = arith.constant 0 : i32
    %c0_i32_0 = arith.constant 0 : i32
    %c0_i32_1 = arith.constant 0 : i32
    return %c0_i32, %c0_i32_0 : i32, i32
  }
  func.func @transform_3(%arg0: i32) -> (i32, i32) {
    %c0_i32 = arith.constant 0 : i32
    %c0_i32_0 = arith.constant 0 : i32
    %c0_i32_1 = arith.constant 0 : i32
    return %c0_i32, %c0_i32_0 : i32, i32
  }
  func.func @transform_4(%arg0: i32) -> (i32, i32) {
    %c0_i32 = arith.constant 0 : i32
    %c0_i32_0 = arith.constant 0 : i32
    %c0_i32_1 = arith.constant 0 : i32
    return %c0_i32, %c0_i32_0 : i32, i32
  }
  func.func @transform_5(%arg0: i32) -> (i32, i32) {
    %c0_i32 = arith.constant 0 : i32
    %c0_i32_0 = arith.constant 0 : i32
    return %arg0, %c0_i32 : i32, i32
  }
}

</mosaic_0001>

<bundles_post_ra>
// kernel: actor_forward.1
= control target key start
LH: loop header
LB: loop body
LE: loop exit
PB: predicated region body
PF: predicated region fallthrough
CT: control target
= control target key end

     0   :  { %s644_s18 = smov 0   ;;  %s777_s0 = inlined_call_operand.vmem [shape: f32[256,8], index: 0, kind: input, shape index: {}]   ;;  %s778_s1 = inlined_call_operand.vmem [shape: f32[8,128], index: 1, kind: input, shape index: {}]   ;;  %s779_s2 = inlined_call_operand.vmem [shape: f32[1,128], index: 2, kind: input, shape index: {}]   ;;  %s780_s3 = inlined_call_operand.vmem [shape: f32[128,128], index: 3, kind: input, shape index: {}]   ;;  %s781_s4 = inlined_call_operand.vmem [shape: f32[1,128], index: 4, kind: input, shape index: {}]   ;;  %s782_s5 = inlined_call_operand.vmem [shape: f32[256,128], index: 5, kind: output, shape index: {}]  }
   0x1 LB: > { %s536_s19 = sadd.s32 4294967295, %s612_s18   ;;  %p540_p0 = scmp.ge.s32.totalorder %s612_s18, 1  ;;  %s612_s18 = sphi %s644_s18, %s15_s18  }
   0x2   : > { %p188_p1 = scmp.lt.s32.totalorder %s612_s18, 3 }
   0x4   : > { %p189_p2 = pnand %p540_p0, %p188_p1 }
   0x5   : > { %s541_s22 = sshll.u32 (!%p189_p2), %s536_s19, 4 }
   0x6   : > { %192 = sbr.rel (%p189_p2) target bundleno = 376 (0x178), region = 40  ;;  %p217_p3 = scmp.lt.s32.totalorder (!%p189_p2), %s541_s22, 31 }
   0xb   : > { %v244_v0 = vld [vmem:[%s778_s1] sm:$0xff]  ;;  %s784_s22 = smov (!%p217_p3, %s541_s22), 31  ;;  %vm249_vm0 = vcmask 64512   ;;  %v394_v11 = vld [vmem:[%s780_s3 + $0x78] sm:$0xff]  ;;  %v393_v12 = vld [vmem:[%s780_s3 + $0x70] sm:$0xff] }
   0xc   : > { %313 = vmatpush.msra.mxu0 %v244_v0  ;;  %563 = vmatpush.msra.mxu3 %v244_v0  ;;  %s542_s23 = sshll.u32 %s784_s22, 3  ;;  %v392_v13 = vld [vmem:[%s780_s3 + $0x68] sm:$0xff]  ;;  %v391_v15 = vld [vmem:[%s780_s3 + $0x60] sm:$0xff]  ;;  %v390_v17 = vld [vmem:[%s780_s3 + $0x58] sm:$0xff] }
   0xd   : > { %s663_s26 = scalar_lea.vmem %s777_s0, %s542_s23  ;;  %399 = vmatpush.msra.mxu1 %v394_v11  ;;  %564 = vmatpush.msra.mxu2 %v394_v11  ;;  %v389_v18 = vld [vmem:[%s780_s3 + $0x50] sm:$0xff]  ;;  %v388_v19 = vld [vmem:[%s780_s3 + $0x48] sm:$0xff]  ;;  %v387_v21 = vld [vmem:[%s780_s3 + $0x40] sm:$0xff]  ;;  %s756_s19 = scalar_lea.vmem %s782_s5, %s542_s23 }
   0xe   : > { %v228_v1 = vld [vmem:[%s663_s26] sm:$0xff]  ;;  %v229_v2 = vld [vmem:[%s663_s26 + $0x8] sm:$0xff]  ;;  %v230_v3 = vld [vmem:[%s663_s26 + $0x10] sm:$0xff]  ;;  %565 = vmatpush.msrb.mxu3 %v394_v11 }
   0xf   : > { %545 = vmatmul.msk.f32.vlgmr.msra.gmra.mxu0 %vm249_vm0, %v228_v1  ;;  %v238_v4 = vld [vmem:[%s663_s26 + $0x50] sm:$0xff]  ;;  %v231_v5 = vld [vmem:[%s663_s26 + $0x18] sm:$0xff]  ;;  %v232_v7 = vld [vmem:[%s663_s26 + $0x20] sm:$0xff]  ;;  %400 = vmatpush.msra.mxu1 %v393_v12 }
  0x10   : > { %555 = vmatmul.msk.f32.vlgmr.msra.gmra.mxu3 %vm249_vm0, %v238_v4  ;;  %v239_v6 = vld [vmem:[%s663_s26 + $0x58] sm:$0xff]  ;;  %v240_v8 = vld [vmem:[%s663_s26 + $0x60] sm:$0xff]  ;;  %v233_v9 = vld [vmem:[%s663_s26 + $0x28] sm:$0xff]  ;;  %566 = vmatpush.msra.mxu2 %v393_v12 }
  0x11   : > { %v241_v10 = vld [vmem:[%s663_s26 + $0x68] sm:$0xff]  ;;  %v234_v14 = vld [vmem:[%s663_s26 + $0x30] sm:$0xff]  ;;  %567 = vmatpush.msrb.mxu3 %v393_v12  ;;  %401 = vmatpush.msra.mxu1 %v392_v13  ;;  %v235_v20 = vld [vmem:[%s663_s26 + $0x38] sm:$0xff] }
  0x12   : > { %v242_v16 = vld [vmem:[%s663_s26 + $0x70] sm:$0xff]  ;;  %568 = vmatpush.msra.mxu2 %v392_v13  ;;  %v243_v22 = vld [vmem:[%s663_s26 + $0x78] sm:$0xff]  ;;  %v384_v25 = vld [vmem:[%s780_s3 + $0x28] sm:$0xff] }
  0x13   : > { %569 = vmatpush.msrb.mxu3 %v392_v13  ;;  %402 = vmatpush.msra.mxu1 %v391_v15  ;;  %v386_v23 = vld [vmem:[%s780_s3 + $0x38] sm:$0xff]  ;;  %v385_v24 = vld [vmem:[%s780_s3 + $0x30] sm:$0xff]  ;;  %v236_v26 = vld [vmem:[%s663_s26 + $0x40] sm:$0xff] }
  0x14   : > { %570 = vmatpush.msra.mxu2 %v391_v15  ;;  %v383_v27 = vld [vmem:[%s780_s3 + $0x20] sm:$0xff]  ;;  %v382_v28 = vld [vmem:[%s780_s3 + $0x18] sm:$0xff]  ;;  %v237_v29 = vld [vmem:[%s663_s26 + $0x48] sm:$0xff] }
  0x15   : > { %403 = vmatpush.msra.mxu1 %v390_v17  ;;  %571 = vmatpush.msrb.mxu3 %v391_v15  ;;  %v381_v30 = vld [vmem:[%s780_s3 + $0x10] sm:$0xff]  ;;  %v380_v31 = vld [vmem:[%s780_s3 + $0x8] sm:$0xff]  ;;  %v379_v32 = vld [vmem:[%s780_s3] sm:$0xff] }
  0x16   : > { %572 = vmatpush.msra.mxu2 %v390_v17  ;;  %v604_v33 = vld [vmem:[%s779_s2] ss:$0 sm:$0xff] }
  0x17   : > { %546 = vmatmul.msk.f32.gmra.mxu0 %vm249_vm0, %v229_v2  ;;  %404 = vmatpush.msra.mxu1 %v389_v18 }
  0x18   : > { %556 = vmatmul.msk.f32.gmra.mxu3 %vm249_vm0, %v239_v6  ;;  %574 = vmatpush.msra.mxu2 %v389_v18 }
  0x19   : > { %573 = vmatpush.msrb.mxu3 %v390_v17  ;;  %405 = vmatpush.msra.mxu1 %v388_v19 }
  0x1a   : > { %576 = vmatpush.msra.mxu2 %v388_v19 }
  0x1b   : > { %575 = vmatpush.msrb.mxu3 %v389_v18  ;;  %406 = vmatpush.msra.mxu1 %v387_v21  ;;  %v605_v18 = vld [vmem:[%s781_s4] ss:$0 sm:$0xff] }
  0x1c   : > { %578 = vmatpush.msra.mxu2 %v387_v21 }
  0x1d   : > { %407 = vmatpush.msra.mxu1 %v386_v23  ;;  %577 = vmatpush.msrb.mxu3 %v388_v19 }
  0x1e   : > { %580 = vmatpush.msra.mxu2 %v386_v23 }
  0x1f   : > { %547 = vmatmul.msk.f32.gmra.mxu0 %vm249_vm0, %v230_v3  ;;  %408 = vmatpush.msra.mxu1 %v385_v24 }
  0x20   : > { %557 = vmatmul.msk.f32.gmra.mxu3 %vm249_vm0, %v240_v8  ;;  %582 = vmatpush.msra.mxu2 %v385_v24 }
  0x21   : > { %579 = vmatpush.msrb.mxu3 %v387_v21  ;;  %409 = vmatpush.msra.mxu1 %v384_v25 }
  0x22   : > { %584 = vmatpush.msra.mxu2 %v384_v25 }
  0x23   : > { %581 = vmatpush.msrb.mxu3 %v386_v23  ;;  %410 = vmatpush.msra.mxu1 %v383_v27 }
  0x24   : > { %586 = vmatpush.msra.mxu2 %v383_v27 }
  0x25   : > { %583 = vmatpush.msrb.mxu3 %v385_v24  ;;  %411 = vmatpush.msra.mxu1 %v382_v28 }
  0x26   : > { %588 = vmatpush.msra.mxu2 %v382_v28 }
  0x27   : > { %548 = vmatmul.msk.f32.gmra.mxu0 %vm249_vm0, %v231_v5  ;;  %585 = vmatpush.msrb.mxu3 %v384_v25 }
  0x28   : > { %558 = vmatmul.msk.f32.gmra.mxu3 %vm249_vm0, %v241_v10  ;;  %412 = vmatpush.msra.mxu1 %v381_v30 }
  0x29   : > { %587 = vmatpush.msrb.mxu3 %v383_v27  ;;  %590 = vmatpush.msra.mxu2 %v381_v30 }
  0x2a   : > { %413 = vmatpush.msra.mxu1 %v380_v31 }
  0x2b   : > { %589 = vmatpush.msrb.mxu3 %v382_v28  ;;  %592 = vmatpush.msra.mxu2 %v380_v31 }
  0x2c   : > { %414 = vmatpush.msra.mxu1 %v379_v32 }
  0x2d   : > { %591 = vmatpush.msrb.mxu3 %v381_v30  ;;  %594 = vmatpush.msra.mxu2 %v379_v32 }
  0x2f   : > { %549 = vmatmul.msk.f32.gmra.mxu0 %vm249_vm0, %v232_v7  ;;  %593 = vmatpush.msrb.mxu3 %v380_v31 }
  0x30   : > { %559 = vmatmul.msk.f32.gmra.mxu3 %vm249_vm0, %v242_v16 }
  0x31   : > { %595 = vmatpush.msrb.mxu3 %v379_v32 }
  0x37   : > { %550 = vmatmul.msk.f32.gmra.mxu0 %vm249_vm0, %v233_v9 }
  0x38   : > { %560 = vmatmul.msk.f32.gmra.mxu3 %vm249_vm0, %v243_v22 }
  0x3f   : > { %551 = vmatmul.msk.f32.gmra.mxu0 %vm249_vm0, %v234_v14 }
  0x47   : > { %552 = vmatmul.msk.f32.gmra.mxu0 %vm249_vm0, %v235_v20 }
  0x4f   : > { %553 = vmatmul.msk.f32.gmra.mxu0 %vm249_vm0, %v236_v26 }
  0x57   : > { %554 = vmatmul.msk.f32.gmra.mxu0 %vm249_vm0, %v237_v29 }
  0x8c   : > { %v315_v34 = vpop.f32.mrf.mxu0 }
  0x8d   : > { %v316_v35 = vadd.f32 %v604_v33, %v315_v34 }
  0x8f   : > { %v363_v36 = vmax.f32 %v316_v35, 0.0 }
  0x91   : > { %415 = vmatmul.f32.vlgmr.msra.gmra.mxu1 %v363_v36 }
  0x93   : > { %v345_v44 = vpop.f32.mrf.mxu3 }
  0x94   : > { %v318_v37 = vpop.f32.mrf.mxu0  ;;  %v346_v12 = vadd.f32 %v604_v33, %v345_v44 }
  0x95   : > { %v319_v38 = vadd.f32 %v604_v33, %v318_v37 }
  0x96   : > { %v373_v13 = vmax.f32 %v346_v12, 0.0 }
  0x97   : > { %v364_v39 = vmax.f32 %v319_v38, 0.0 }
  0x99   : > { %418 = vmatmul.f32.gmra.mxu1 %v364_v39 }
  0x9b   : > { %v348_v48 = vpop.f32.mrf.mxu3 }
  0x9c   : > { %v321_v40 = vpop.f32.mrf.mxu0  ;;  %v349_v14 = vadd.f32 %v604_v33, %v348_v48 }
  0x9d   : > { %v322_v41 = vadd.f32 %v604_v33, %v321_v40 }
  0x9e   : > { %v374_v15 = vmax.f32 %v349_v14, 0.0 }
  0x9f   : > { %v365_v42 = vmax.f32 %v322_v41, 0.0 }
  0xa1   : > { %421 = vmatmul.f32.gmra.mxu1 %v365_v42 }
  0xa3   : > { %v351_v52 = vpop.f32.mrf.mxu3 }
  0xa4   : > { %v324_v43 = vpop.f32.mrf.mxu0  ;;  %v352_v16 = vadd.f32 %v604_v33, %v351_v52 }
  0xa5   : > { %v325_v45 = vadd.f32 %v604_v33, %v324_v43 }
  0xa6   : > { %v375_v17 = vmax.f32 %v352_v16, 0.0 }
  0xa7   : > { %v366_v46 = vmax.f32 %v325_v45, 0.0 }
  0xa9   : > { %424 = vmatmul.f32.gmra.mxu1 %v366_v46 }
  0xab   : > { %v354_v56 = vpop.f32.mrf.mxu3 }
  0xac   : > { %v327_v47 = vpop.f32.mrf.mxu0  ;;  %v355_v58 = vadd.f32 %v604_v33, %v354_v56 }
  0xad   : > { %v328_v49 = vadd.f32 %v604_v33, %v327_v47 }
  0xae   : > { %v376_v60 = vmax.f32 %v355_v58, 0.0 }
  0xaf   : > { %v367_v50 = vmax.f32 %v328_v49, 0.0 }
  0xb0   : > { %454 = vmatmul.f32.vlgmr.msrb.gmra.mxu3 %v376_v60 }
  0xb1   : > { %427 = vmatmul.f32.gmra.mxu1 %v367_v50 }
  0xb3   : > { %v357_v62 = vpop.f32.mrf.mxu3 }
  0xb4   : > { %v330_v51 = vpop.f32.mrf.mxu0  ;;  %v358_v0 = vadd.f32 %v604_v33, %v357_v62 }
  0xb5   : > { %v331_v53 = vadd.f32 %v604_v33, %v330_v51 }
  0xb6   : > { %v377_v2 = vmax.f32 %v358_v0, 0.0 }
  0xb7   : > { %v368_v54 = vmax.f32 %v331_v53, 0.0 }
  0xb8   : > { %457 = vmatmul.f32.gmra.mxu3 %v377_v2 }
  0xb9   : > { %430 = vmatmul.f32.gmra.mxu1 %v368_v54 }
  0xbb   : > { %v360_v4 = vpop.f32.mrf.mxu3 }
  0xbc   : > { %v333_v55 = vpop.f32.mrf.mxu0  ;;  %v361_v6 = vadd.f32 %v604_v33, %v360_v4 }
  0xbd   : > { %v334_v57 = vadd.f32 %v604_v33, %v333_v55 }
  0xbe   : > { %v378_v8 = vmax.f32 %v361_v6, 0.0 }
  0xbf   : > { %v369_v59 = vmax.f32 %v334_v57, 0.0 }
  0xc0   : > { %460 = vmatmul.f32.gmra.mxu3 %v378_v8 }
  0xc1   : > { %433 = vmatmul.f32.vlgmr.msra.gmra.mxu2 %v369_v59 }
  0xc4   : > { %v336_v61 = vpop.f32.mrf.mxu0 }
  0xc5   : > { %v337_v63 = vadd.f32 %v604_v33, %v336_v61 }
  0xc7   : > { %v370_v1 = vmax.f32 %v337_v63, 0.0 }
  0xc9   : > { %436 = vmatmul.f32.gmra.mxu2 %v370_v1 }
  0xcc   : > { %v339_v3 = vpop.f32.mrf.mxu0 }
  0xcd   : > { %v340_v5 = vadd.f32 %v604_v33, %v339_v3 }
  0xcf   : > { %v371_v7 = vmax.f32 %v340_v5, 0.0 }
  0xd1   : > { %439 = vmatmul.f32.gmra.mxu2 %v371_v7 }
  0xd4   : > { %v342_v9 = vpop.f32.mrf.mxu0 }
  0xd5   : > { %v343_v10 = vadd.f32 %v604_v33, %v342_v9 }
  0xd7   : > { %v372_v11 = vmax.f32 %v343_v10, 0.0 }
  0xd9   : > { %442 = vmatmul.f32.gmra.mxu2 %v372_v11 }
  0xe1   : > { %445 = vmatmul.f32.gmra.mxu2 %v373_v13 }
  0xe9   : > { %448 = vmatmul.f32.gmra.mxu2 %v374_v15 }
  0xf1   : > { %451 = vmatmul.f32.gmra.mxu2 %v375_v17 }
 0x10e   : > { %v416_v19 = vpop.f32.mrf.mxu1 }
 0x10f   : > { %v417_v20 = vadd.f32 %v605_v18, %v416_v19 }
 0x111   : > { %464 = vst [vmem:[%s756_s19] sm:$0xff] %v417_v20 }
 0x116   : > { %v419_v21 = vpop.f32.mrf.mxu1 }
 0x117   : > { %v420_v22 = vadd.f32 %v605_v18, %v419_v21 }
 0x119   : > { %465 = vst [vmem:[%s756_s19 + $0x8] sm:$0xff] %v420_v22 }
 0x11e   : > { %v422_v23 = vpop.f32.mrf.mxu1 }
 0x11f   : > { %v423_v24 = vadd.f32 %v605_v18, %v422_v23 }
 0x121   : > { %466 = vst [vmem:[%s756_s19 + $0x10] sm:$0xff] %v423_v24 }
 0x126   : > { %v425_v25 = vpop.f32.mrf.mxu1 }
 0x127   : > { %v426_v26 = vadd.f32 %v605_v18, %v425_v25 }
 0x129   : > { %467 = vst [vmem:[%s756_s19 + $0x18] sm:$0xff] %v426_v26 }
 0x12e   : > { %v428_v27 = vpop.f32.mrf.mxu1 }
 0x12f   : > { %v429_v28 = vadd.f32 %v605_v18, %v428_v27 }
 0x131   : > { %468 = vst [vmem:[%s756_s19 + $0x20] sm:$0xff] %v429_v28 }
 0x133   : > { %v455_v32 = vpop.f32.mrf.mxu3 }
 0x134   : > { %v456_v34 = vadd.f32 %v605_v18, %v455_v32 }
 0x136   : > { %v431_v29 = vpop.f32.mrf.mxu1  ;;  %477 = vst [vmem:[%s756_s19 + $0x68] sm:$0xff] %v456_v34 }
 0x137   : > { %v432_v30 = vadd.f32 %v605_v18, %v431_v29 }
 0x139   : > { %469 = vst [vmem:[%s756_s19 + $0x28] sm:$0xff] %v432_v30 }
 0x13b   : > { %v458_v36 = vpop.f32.mrf.mxu3 }
 0x13c   : > { %v459_v38 = vadd.f32 %v605_v18, %v458_v36 }
 0x13e   : > { %478 = vst [vmem:[%s756_s19 + $0x70] sm:$0xff] %v459_v38 }
 0x143   : > { %v461_v40 = vpop.f32.mrf.mxu3 }
 0x144   : > { %v434_v31 = vpop.f32.mrf.mxu2  ;;  %v462_v42 = vadd.f32 %v605_v18, %v461_v40 }
 0x145   : > { %v435_v33 = vadd.f32 %v605_v18, %v434_v31 }
 0x146   : > { %479 = vst [vmem:[%s756_s19 + $0x78] sm:$0xff] %v462_v42 }
 0x147   : > { %470 = vst [vmem:[%s756_s19 + $0x30] sm:$0xff] %v435_v33 }
 0x14c   : > { %v437_v35 = vpop.f32.mrf.mxu2 }
 0x14d   : > { %v438_v37 = vadd.f32 %v605_v18, %v437_v35 }
 0x14f   : > { %471 = vst [vmem:[%s756_s19 + $0x38] sm:$0xff] %v438_v37 }
 0x154   : > { %v440_v39 = vpop.f32.mrf.mxu2 }
 0x155   : > { %v441_v41 = vadd.f32 %v605_v18, %v440_v39 }
 0x157   : > { %472 = vst [vmem:[%s756_s19 + $0x40] sm:$0xff] %v441_v41 }
 0x15c   : > { %v443_v43 = vpop.f32.mrf.mxu2 }
 0x15d   : > { %v444_v44 = vadd.f32 %v605_v18, %v443_v43 }
 0x15f   : > { %473 = vst [vmem:[%s756_s19 + $0x48] sm:$0xff] %v444_v44 }
 0x164   : > { %v446_v45 = vpop.f32.mrf.mxu2 }
 0x165   : > { %v447_v46 = vadd.f32 %v605_v18, %v446_v45 }
 0x167   : > { %474 = vst [vmem:[%s756_s19 + $0x50] sm:$0xff] %v447_v46 }
 0x16c   : > { %v449_v47 = vpop.f32.mrf.mxu2 }
 0x16d   : > { %v450_v48 = vadd.f32 %v605_v18, %v449_v47 }
 0x16f   : > { %475 = vst [vmem:[%s756_s19 + $0x58] sm:$0xff] %v450_v48 }
 0x174   : > { %v452_v49 = vpop.f32.mrf.mxu2 }
 0x175   : > { %v453_v50 = vadd.f32 %v605_v18, %v452_v49 }
 0x177   : > { %476 = vst [vmem:[%s756_s19 + $0x60] sm:$0xff] %v453_v50 }
 0x178 PF: > { %s15_s18 = sadd.s32 1, %s612_s18  }
 0x179   : > { %p12_p4 = scmp.ge.s32.totalorder %s15_s18, 4  }
 0x17b   :  { %14 = sbr.rel (!%p12_p4) target bundleno = 1 (0x1), region = 70 }

</bundles_post_ra>
